<compile_context>
chip_gen: v6e
topology: v6e:2x2x1
jax: 0.10.0
libtpu: 0.0.40
codegen_flags: <defaults>
</compile_context>

<pallas_src>
import jax
import jax.numpy as jnp
from jax.experimental import pallas as pl
from jax.experimental.pallas import tpu as pltpu

LANE = 128
SUBLANE = 8


def linear_kernel(x_ref, wb_ref, o_ref):
    # x_ref: (block_rows, 128) f32 in VMEM (batch mapped onto lanes).
    # wb_ref: (2,) f32 in SMEM -> wb_ref[0] = weight, wb_ref[1] = bias.
    w = wb_ref[0]
    b = wb_ref[1]
    # VPU fused multiply-add (co-issues with load/store in one bundle).
    o_ref[...] = x_ref[...] * w + b


def linear_forward(x, weight, bias, *, block_rows=512):
    """nn.Linear(1, 1) forward: y = x @ W^T + b.

    x: (B, 1) f32, weight: (1, 1) f32, bias: (1,) f32 -> (B, 1) f32.
    Internally the batch is flattened, zero-padded and viewed as (rows, 128)
    so the last dim is lane-dense; a 1-D grid over row-blocks auto-pipelines
    for large B.
    """
    orig_shape = x.shape
    n = x.size
    x_flat = jnp.ravel(x)

    # Rows of 128 lanes needed, rounded so block_shape satisfies the (8, 128)
    # tiling constraint and divides the padded row count evenly.
    rows_needed = pl.cdiv(n, LANE)
    br = block_rows
    if rows_needed <= br:
        br = max(SUBLANE, ((rows_needed + SUBLANE - 1) // SUBLANE) * SUBLANE)
    rows = ((rows_needed + br - 1) // br) * br
    padded = rows * LANE

    x2d = jnp.pad(x_flat, (0, padded - n)).reshape(rows, LANE)
    # Pack weight and bias into a single SMEM scalar array (one operand).
    wb = jnp.concatenate([weight.reshape(1), bias.reshape(1)]).astype(x.dtype)

    grid = (rows // br,)
    y2d = pl.pallas_call(
        linear_kernel,
        out_shape=jax.ShapeDtypeStruct((rows, LANE), x.dtype),
        grid=grid,
        in_specs=[
            pl.BlockSpec((br, LANE), lambda i: (i, 0)),            # x blocks, VMEM
            pl.BlockSpec(memory_space=pltpu.MemorySpace.SMEM),     # packed (w, b)
        ],
        out_specs=pl.BlockSpec((br, LANE), lambda i: (i, 0)),      # lane-dense out
        compiler_params=pltpu.CompilerParams(
            dimension_semantics=("parallel",),  # shard batch blocks across v7x's 2 TCs
        ),
    )(x2d, wb)

    return y2d.reshape(-1)[:n].reshape(orig_shape)


if __name__ == "__main__":
    key = jax.random.PRNGKey(0)
    kx, kw, kb = jax.random.split(key, 3)

    batch = 8
    x = jax.random.normal(kx, (batch, 1), dtype=jnp.float32)

    # Deterministic init mimicking nn.Linear(1, 1): U(-1/sqrt(in), 1/sqrt(in)) = U(-1, 1)
    weight = jax.random.uniform(kw, (1, 1), dtype=jnp.float32, minval=-1.0, maxval=1.0)
    bias = jax.random.uniform(kb, (1,), dtype=jnp.float32, minval=-1.0, maxval=1.0)

    y = linear_forward(x, weight, bias)
    jax.block_until_ready(y)

    # Reference check against plain JAX
    y_ref = x @ weight.T + bias
    assert y.shape == y_ref.shape, "shape mismatch vs reference"
    assert jnp.allclose(y, y_ref, atol=1e-6), "mismatch vs reference"

    print("KERNEL_OK")
</pallas_src>

<mosaic_0001>
module attributes {stable_mosaic.version = 11 : i64} {
  func.func @linear_kernel(%arg0: i32, %arg1: memref<8x128xf32, #tpu.memory_space<vmem>>, %arg2: memref<2xf32, #tpu.memory_space<smem>>, %arg3: memref<8x128xf32, #tpu.memory_space<vmem>>) attributes {dimension_semantics = [#tpu.dimension_semantics<parallel>], iteration_bounds = array<i64: 1>, scalar_prefetch = 0 : i64, scratch_operands = 0 : i64, tpu.core_type = #tpu.core_type<tc>, window_params = [{transform_indices = @transform_0, window_bounds = array<i64: 8, 128>}, {transform_indices = @transform_1, window_bounds = array<i64: 2>}, {transform_indices = @transform_2, window_bounds = array<i64: 8, 128>}]} {
    %c0 = arith.constant 0 : index
    %0 = memref.load %arg2[%c0] : memref<2xf32, #tpu.memory_space<smem>>
    %c1 = arith.constant 1 : index
    %1 = memref.load %arg2[%c1] : memref<2xf32, #tpu.memory_space<smem>>
    %c0_0 = arith.constant 0 : index
    %c0_1 = arith.constant 0 : index
    %2 = vector.load %arg1[%c0_0, %c0_1] : memref<8x128xf32, #tpu.memory_space<vmem>>, vector<8x128xf32>
    %3 = vector.broadcast %0 : f32 to vector<8x128xf32>
    %4 = arith.mulf %2, %3 : vector<8x128xf32>
    %5 = vector.broadcast %1 : f32 to vector<8x128xf32>
    %6 = arith.addf %4, %5 : vector<8x128xf32>
    %c0_2 = arith.constant 0 : index
    %c0_3 = arith.constant 0 : index
    %7 = vector.load %arg3[%c0_2, %c0_3] : memref<8x128xf32, #tpu.memory_space<vmem>>, vector<8x128xf32>
    tpu.vector_store %arg3[%c0_2, %c0_3], %6 {strides = array<i32>} : memref<8x128xf32, #tpu.memory_space<vmem>>, vector<8x128xf32>,
    return
  }
  func.func @transform_0(%arg0: i32) -> (i32, i32) {
    %c0_i32 = arith.constant 0 : i32
    %c0_i32_0 = arith.constant 0 : i32
    return %arg0, %c0_i32 : i32, i32
  }
  func.func @transform_1(%arg0: i32) -> i32 {
    %c0_i32 = arith.constant 0 : i32
    %c0_i32_0 = arith.constant 0 : i32
    return %c0_i32 : i32
  }
  func.func @transform_2(%arg0: i32) -> (i32, i32) {
    %c0_i32 = arith.constant 0 : i32
    %c0_i32_0 = arith.constant 0 : i32
    return %arg0, %c0_i32 : i32, i32
  }
}

</mosaic_0001>

<bundles_post_ra>
// kernel: tpu_custom_call.1
= control target key start
LH: loop header
LB: loop body
LE: loop exit
PB: predicated region body
PF: predicated region fallthrough
CT: control target
= control target key end

     0   :  { %7 = vsyncpa [#allocation3], 0  ;;  %s150_s0 = inlined_call_operand.hbm [shape: f32[8,128], index: 0, kind: input, shape index: {}]   ;;  %s151_s1 = inlined_call_operand.vmem [shape: f32[2], index: 1, kind: input, shape index: {}]   ;;  %s152_s2 = inlined_call_operand.hbm [shape: f32[8,128], index: 2, kind: output, shape index: {}]  }
   0x1   :  { %8 = vsyncpa [#allocation5], 0 }
   0x2   :  { %9 = vsyncpa [#allocation4], 0  ;;  %s26_s11 = sshll.u32 %s151_s1, 4  ;;  %s123_s12 = smov [#allocation2]   ;;  %s27_s11 = int_to_ptr.vmem [resolvable:$true] %s26_s11 }
   0x3   :  { %s16_s13 = sshll.u32 %s123_s12, 4  ;;  %s17_s13 = int_to_ptr.vmem [resolvable:$true] %s16_s13 }
   0x4   :  { %s73_s14 = scalar_lea.vmem %s17_s13, 128  ;;  %p78_p1 = scmp.lt.s32.totalorder %s17_s13, %s17_s13 }
   0x5   :  { %p74_p0 = scmp.ne.s32.totalorder %s17_s13, %s73_s14  ;;  %p79_p2 = scmp.lt.s32.totalorder %s73_s14, %s73_s14 }
   0x7   :  { %p80_p3 = por %p79_p2, %p78_p1 }
   0x9   :  { %p81_p4 = pnand %p80_p3, %p74_p0 }
   0xb   :  { %84 = shalt.err (!%p81_p4)
}
   0xc   :  { %19 = dma.hbm_to_vmem [thread:$0]  %s150_s0, 128, %s17_s13, [#allocation3]  }
   0xd   :  { %s85_s17 = scalar_lea.vmem %s27_s11, 16  ;;  %p90_p6 = scmp.lt.s32.totalorder %s27_s11, %s27_s11 }
   0xe   :  { %p86_p5 = scmp.ne.s32.totalorder %s27_s11, %s85_s17  ;;  %p91_p7 = scmp.lt.s32.totalorder %s85_s17, %s85_s17 }
  0x10   :  { %p92_p8 = por %p91_p7, %p90_p6 }
  0x12   :  { %p93_p9 = pnand %p92_p8, %p86_p5 }
  0x14   :  { %96 = shalt.err (!%p93_p9)
}
  0x15   :  { %s124_s1 = smov [#allocation6]  }
  0x16   :  { %29 = dma.vmem_to_smem %s27_s11, 16, %s124_s1, [#allocation5]  }
  0x17   :  { %117 = dma.done.wait [#allocation3], 128  }
  0x18   :  { %118 = vsyncadd [#allocation3], 4294967168 }
  0x19   :  { %119 = dma.done.wait [#allocation5], 16  }
  0x1a   :  { %120 = vsyncadd [#allocation5], 4294967280 }
  0x1b   :  { %36 = sfence }
  0x1c   :  { %s37_s18 = sld [smem:[#allocation6]]  ;;  %v39_v0 = vld [vmem:[#allocation2] sm:$0xff]  ;;  %s125_s20 = smov [#allocation7]  }
  0x1d   :  { %s61_s19 = sld [smem:[#allocation6 + $0x1]]  ;;  %s51_s0 = sshll.u32 %s125_s20, 4  ;;  %s52_s0 = int_to_ptr.vmem [resolvable:$true] %s51_s0 }
  0x1e   :  { %s97_s21 = scalar_lea.vmem %s52_s0, 128  ;;  %p102_p11 = scmp.lt.s32.totalorder %s52_s0, %s52_s0 }
  0x1f   :  { %p98_p10 = scmp.ne.s32.totalorder %s52_s0, %s97_s21  ;;  %p103_p12 = scmp.lt.s32.totalorder %s97_s21, %s97_s21 }
  0x21   :  { %p104_p13 = por %p103_p12, %p102_p11 }
  0x22   :  { %v40_v1 = vstv %s37_s18 }
  0x23   :  { %v41_v2 = vmul.f32 %v40_v1, %v39_v0  ;;  %v42_v3 = vstv %s61_s19  ;;  %p105_p0 = pnand %p104_p13, %p98_p10 }
  0x25   :  { %v43_v4 = vadd.f32 %v42_v3, %v41_v2 }
  0x27   :  { %44 = vst [vmem:[#allocation7] sm:$0xff] %v43_v4 }
  0x28   :  { %108 = shalt.err (!%p105_p0)
}
  0x29   :  { %54 = dma.vmem_to_hbm [thread:$0]  %s52_s0, 128, %s152_s2, [#allocation4]  }
  0x2a   :  { %121 = dma.done.wait [#allocation4], 128  }
  0x2b   :  { %122 = vsyncadd [#allocation4], 4294967168 }
  0x2c   :  { %58 = vsyncpa [#allocation3], 1 }
  0x2d   :  { %59 = vsyncpa [#allocation4], 1 }
  0x2e   :  { %60 = vsyncpa [#allocation5], 1 }

</bundles_post_ra>
